<compile_context>
chip_gen: v6e
topology: v6e:2x2x1
jax: 0.10.0
libtpu: 0.0.40
codegen_flags: <defaults>
</compile_context>

<pallas_src>
import math

import jax
import jax.numpy as jnp
from jax.experimental import pallas as pl
from jax.experimental.pallas import tpu as pltpu

KSIZE = 5                      # Gaussian kernel size for get_hfc
SIGMA = 1.0                    # Gaussian sigma
PCT = 3                        # normalization_percentile_threshold
DO_MEDIAN_PADDING = True
SUB_MASK = True
VMEM_LIMIT_BYTES = 32 * 1024 * 1024   # explicit scoped-VMEM limit (safe on v5e/v6e/v7x)


# ---------------------------------------------------------------------------
# Static parameters
# ---------------------------------------------------------------------------
def _gauss_taps(ksize, sigma):
    half = (ksize - 1) / 2.0
    w = [math.exp(-0.5 * ((i - half) / sigma) ** 2) for i in range(ksize)]
    s = sum(w)
    return tuple(v / s for v in w)


GAUSS = _gauss_taps(KSIZE, SIGMA)     # python-float taps (baked into the kernel)
RADIUS = (KSIZE - 1) // 2


def _band_matrix(n, taps):
    # Reference-only: zero-padded 'same' 1-D convolution as a band matrix.
    k = len(taps)
    r = (k - 1) // 2
    g = jnp.asarray(taps, dtype=jnp.float32)
    i = jnp.arange(n)[:, None]
    a = jnp.arange(n)[None, :]
    d = a - i + r
    return jnp.where((d >= 0) & (d < k), g[jnp.clip(d, 0, k - 1)], 0.0).astype(jnp.float32)


# ---------------------------------------------------------------------------
# In-kernel helpers
# ---------------------------------------------------------------------------
def _shift_zero(x, k, axis):
    """out[..., i, ...] = x[..., i+k, ...], zero padded; k static."""
    if k == 0:
        return x
    n = x.shape[axis]
    pad_shape = list(x.shape)
    pad_shape[axis] = abs(k)
    zeros = jnp.zeros(pad_shape, x.dtype)
    idx = [slice(None)] * x.ndim
    if k > 0:
        idx[axis] = slice(k, n)
        return jnp.concatenate([x[tuple(idx)], zeros], axis=axis)
    idx[axis] = slice(0, n + k)
    return jnp.concatenate([zeros, x[tuple(idx)]], axis=axis)


def _blur5(xp, taps, h_axis, w_axis):
    """Separable zero-padded 5-tap Gaussian blur via shifts + VPU MACs (f32)."""
    r = len(taps) // 2
    # W pass
    acc = taps[r] * xp
    for k in range(1, r + 1):
        acc = acc + taps[r + k] * _shift_zero(xp, +k, w_axis) \
                  + taps[r - k] * _shift_zero(xp, -k, w_axis)
    # H pass
    out = taps[r] * acc
    for k in range(1, r + 1):
        out = out + taps[r + k] * _shift_zero(acc, +k, h_axis) \
                  + taps[r - k] * _shift_zero(acc, -k, h_axis)
    return out


# ---------------------------------------------------------------------------
# Pallas kernels
# ---------------------------------------------------------------------------
def _hfc_conv_kernel(fill_ref, x_ref, m_ref, res_ref):
    """Median padding + 5x5 Gaussian high-pass for one (sample, channel-block)."""
    x = x_ref[...]                                      # (1, cb, H, W) f32
    if DO_MEDIAN_PADDING:
        m = m_ref[...]                                  # (1, 1, H, W)
        xp = m * x + (1.0 - m) * fill_ref[...]          # fill: (1, cb, 1, 1) broadcast
    else:
        xp = x
    blur = _blur5(xp, GAUSS, h_axis=2, w_axis=3)
    res_ref[...] = xp - blur


def _normalize_kernel(res_ref, m_ref, rmin_ref, rinv_ref, out_ref):
    """Per-(n,c) percentile normalization + mask multiply on lane-dense (1, C, T) tiles."""
    out = (res_ref[...] - rmin_ref[...]) * rinv_ref[...]   # (1,C,1) scalars over lanes
    if SUB_MASK:
        out = out * m_ref[...]                             # (1,1,T) over channels
    out_ref[...] = out


# ---------------------------------------------------------------------------
# Tiling heuristics
# ---------------------------------------------------------------------------
def _pick_channel_block(C, H, W):
    cap = max(1, (2 * 1024 * 1024) // (H * W * 4))   # keep each block ~<=2 MiB
    cap = min(cap, C)
    if C > 1:
        cap = min(cap, max(1, C // 2))               # >=2 channel blocks -> megacore work
    for d in range(cap, 0, -1):
        if C % d == 0:
            return d
    return 1


def _pick_hw_tile(HW, C):
    cap = max(128, (4 * 1024 * 1024) // (max(C, 1) * 4))
    if HW <= cap or HW % 128 != 0:
        return HW, 1
    for t in range(min(cap, HW) // 128, 0, -1):
        tt = t * 128
        if HW % tt == 0:
            return tt, HW // tt
    return HW, 1


# ---------------------------------------------------------------------------
# Wrapper
# ---------------------------------------------------------------------------
def hfc_filter(x, mask):
    N, C, H, W = x.shape
    HW = H * W

    # TODO(synk): torch lower median (sorted[(HW-1)//2]) needs a sort; plain-JAX glue.
    med = jnp.sort(x.reshape(N, C, HW), axis=-1)[..., (HW - 1) // 2]
    fill = (med + 0.2).reshape(N, C, 1, 1).astype(jnp.float32)

    cb = _pick_channel_block(C, H, W)
    cparams = pltpu.CompilerParams(
        dimension_semantics=("parallel", "parallel"),
        vmem_limit_bytes=VMEM_LIMIT_BYTES)

    spec_xc = pl.BlockSpec((1, cb, H, W), lambda n, c: (n, c, 0, 0))
    res = pl.pallas_call(
        _hfc_conv_kernel,
        out_shape=jax.ShapeDtypeStruct((N, C, H, W), jnp.float32),
        grid=(N, C // cb),
        in_specs=[
            pl.BlockSpec((1, cb, 1, 1), lambda n, c: (n, c, 0, 0)),   # fill (median+0.2)
            spec_xc,                                                  # x
            pl.BlockSpec((1, 1, H, W), lambda n, c: (n, 0, 0, 0)),    # mask
        ],
        out_specs=spec_xc,
        compiler_params=cparams,
    )(fill, x, mask)

    # Percentiles of temp = trunc(res*256)/256.  The quantization is monotone, so
    # sorted(temp)[k] == quant(sorted(res)[k]): sort res once and quantize only the
    # four order statistics needed -> no full-size temp HBM round trip.
    # TODO(synk): np.percentile needs a sort; no Mosaic lowering (an in-kernel 1/256-bucket
    # histogram would remove this XLA sort entirely).
    s = jnp.sort(res.reshape(N, C, HW), axis=-1)

    def _order_stat_quantized(q):
        pos = q / 100.0 * (HW - 1)
        lo = int(math.floor(pos))
        hi = min(lo + 1, HW - 1)
        frac = pos - lo
        q_lo = jnp.trunc(s[..., lo] * 256.0) * (1.0 / 256.0)
        q_hi = jnp.trunc(s[..., hi] * 256.0) * (1.0 / 256.0)
        return q_lo + frac * (q_hi - q_lo)

    rmin = _order_stat_quantized(PCT)            # (N, C)
    rmax = _order_stat_quantized(100 - PCT)      # (N, C)
    # No guard: p97 == p3 yields inf/nan exactly like the reference division.
    rinv = 1.0 / (rmax - rmin)

    T, n_t = _pick_hw_tile(HW, C)
    res3 = res.reshape(N, C, HW)
    mask3 = mask.reshape(N, 1, HW)
    out3 = pl.pallas_call(
        _normalize_kernel,
        out_shape=jax.ShapeDtypeStruct((N, C, HW), jnp.float32),
        grid=(N, n_t),
        in_specs=[
            pl.BlockSpec((1, C, T), lambda n, t: (n, 0, t)),   # res
            pl.BlockSpec((1, 1, T), lambda n, t: (n, 0, t)),   # mask
            pl.BlockSpec((1, C, 1), lambda n, t: (n, 0, 0)),   # rmin per row
            pl.BlockSpec((1, C, 1), lambda n, t: (n, 0, 0)),   # 1/(rmax-rmin) per row
        ],
        out_specs=pl.BlockSpec((1, C, T), lambda n, t: (n, 0, t)),
        input_output_aliases={0: 0},                           # in-place over res
        compiler_params=cparams,
    )(res3, mask3, rmin.reshape(N, C, 1), rinv.reshape(N, C, 1))
    return out3.reshape(N, C, H, W)


# ---------------------------------------------------------------------------
# Pure-JAX f32 reference of the same forward (for correctness check)
# ---------------------------------------------------------------------------
def hfc_filter_reference(x, mask):
    N, C, H, W = x.shape
    HW = H * W
    gh = _band_matrix(H, GAUSS)
    gw = _band_matrix(W, GAUSS)
    if DO_MEDIAN_PADDING:
        med = jnp.sort(x.reshape(N, C, HW), axis=-1)[..., (HW - 1) // 2]
        xp = mask * x + (1.0 - mask) * (med[:, :, None, None] + 0.2)
    else:
        xp = x
    blur = jnp.einsum("ia,ncab,bj->ncij", gh, xp, gw, precision="highest")
    res = xp - blur
    temp = jnp.trunc(res * 256.0) / 256.0
    s = jnp.sort(temp.reshape(N, C, HW), axis=-1)

    def _pct(q):
        pos = q / 100.0 * (HW - 1)
        lo = int(math.floor(pos))
        hi = min(lo + 1, HW - 1)
        frac = pos - lo
        return s[..., lo] + frac * (s[..., hi] - s[..., lo])

    rmin = _pct(PCT)[:, :, None, None]
    rmax = _pct(100 - PCT)[:, :, None, None]
    out = (res - rmin) / (rmax - rmin)
    if SUB_MASK:
        out = out * mask
    return out


# ---------------------------------------------------------------------------
if __name__ == "__main__":
    key = jax.random.PRNGKey(0)
    kx, _ = jax.random.split(key)
    N, C, H, W = 2, 4, 16, 16
    x = jax.random.normal(kx, (N, C, H, W), dtype=jnp.float32)

    # binary mask with a central circular region of ones (typical usage)
    yy = jnp.arange(H, dtype=jnp.float32)[:, None] - (H - 1) / 2.0
    xx = jnp.arange(W, dtype=jnp.float32)[None, :] - (W - 1) / 2.0
    circ = ((yy ** 2 + xx ** 2) <= (0.45 * H) ** 2).astype(jnp.float32)
    mask = jnp.broadcast_to(circ[None, None], (N, 1, H, W)).astype(jnp.float32)

    out = jax.block_until_ready(jax.jit(hfc_filter)(x, mask))
    ref = jax.block_until_ready(hfc_filter_reference(x, mask))

    assert out.shape == (N, C, H, W)
    max_err = float(jnp.max(jnp.abs(out - ref)))
    # f32 throughout; tolerance covers a possible 1/256 quantization-bucket flip at the
    # percentile ranks from fp association differences (typical error is ~1e-6).
    assert max_err < 1e-2, f"max_err={max_err}"
    print("KERNEL_OK")
</pallas_src>

<mosaic_0001>
module attributes {stable_mosaic.version = 11 : i64} {
  func.func @_hfc_conv_kernel(%arg0: i32, %arg1: i32, %arg2: memref<1x2x1x1xf32, #tpu.memory_space<vmem>>, %arg3: memref<1x2x16x16xf32, #tpu.memory_space<vmem>>, %arg4: memref<1x1x16x16xf32, #tpu.memory_space<vmem>>, %arg5: memref<1x2x16x16xf32, #tpu.memory_space<vmem>>) attributes {dimension_semantics = [#tpu.dimension_semantics<parallel>, #tpu.dimension_semantics<parallel>], iteration_bounds = array<i64: 2, 2>, scalar_prefetch = 0 : i64, scratch_operands = 0 : i64, tpu.core_type = #tpu.core_type<tc>, window_params = [{transform_indices = @transform_0, window_bounds = array<i64: 1, 2, 1, 1>}, {transform_indices = @transform_1, window_bounds = array<i64: 1, 2, 16, 16>}, {transform_indices = @transform_2, window_bounds = array<i64: 1, 1, 16, 16>}, {transform_indices = @transform_3, window_bounds = array<i64: 1, 2, 16, 16>}]} {
    %c0 = arith.constant 0 : index
    %c0_0 = arith.constant 0 : index
    %c0_1 = arith.constant 0 : index
    %c0_2 = arith.constant 0 : index
    %0 = vector.load %arg3[%c0, %c0_0, %c0_1, %c0_2] : memref<1x2x16x16xf32, #tpu.memory_space<vmem>>, vector<1x2x16x16xf32>
    %c0_3 = arith.constant 0 : index
    %c0_4 = arith.constant 0 : index
    %c0_5 = arith.constant 0 : index
    %c0_6 = arith.constant 0 : index
    %1 = vector.load %arg4[%c0_3, %c0_4, %c0_5, %c0_6] : memref<1x1x16x16xf32, #tpu.memory_space<vmem>>, vector<1x1x16x16xf32>
    %2 = vector.broadcast %1 : vector<1x1x16x16xf32> to vector<1x2x16x16xf32>
    %3 = arith.mulf %2, %0 : vector<1x2x16x16xf32>
    %cst = arith.constant 1.000000e+00 : f32
    %4 = vector.broadcast %cst : f32 to vector<1x1x16x16xf32>
    %5 = arith.subf %4, %1 : vector<1x1x16x16xf32>
    %c0_7 = arith.constant 0 : index
    %c0_8 = arith.constant 0 : index
    %c0_9 = arith.constant 0 : index
    %c0_10 = arith.constant 0 : index
    %6 = vector.load %arg2[%c0_7, %c0_8, %c0_9, %c0_10] : memref<1x2x1x1xf32, #tpu.memory_space<vmem>>, vector<1x2x1x1xf32>
    %7 = vector.broadcast %5 : vector<1x1x16x16xf32> to vector<1x2x16x16xf32>
    %8 = vector.broadcast %6 : vector<1x2x1x1xf32> to vector<1x2x16x16xf32>
    %9 = arith.mulf %7, %8 : vector<1x2x16x16xf32>
    %10 = arith.addf %3, %9 : vector<1x2x16x16xf32>
    %cst_11 = arith.constant 0.402619958 : f32
    %11 = vector.broadcast %cst_11 : f32 to vector<1x2x16x16xf32>
    %12 = arith.mulf %11, %10 : vector<1x2x16x16xf32>
    %cst_12 = arith.constant 0.000000e+00 : f32
    %13 = vector.broadcast %cst_12 : f32 to vector<1x2x16x1xf32>
    %14 = vector.extract_strided_slice %10 {offsets = [0, 0, 0, 1], sizes = [1, 2, 16, 15], strides = [1, 1, 1, 1]} : vector<1x2x16x16xf32> to vector<1x2x16x15xf32>
    %15 = tpu.concatenate %14, %13 in 3 : vector<1x2x16x15xf32>, vector<1x2x16x1xf32> -> vector<1x2x16x16xf32>
    %cst_13 = arith.constant 0.244201347 : f32
    %16 = vector.broadcast %cst_13 : f32 to vector<1x2x16x16xf32>
    %17 = arith.mulf %16, %15 : vector<1x2x16x16xf32>
    %18 = arith.addf %12, %17 : vector<1x2x16x16xf32>
    %cst_14 = arith.constant 0.000000e+00 : f32
    %19 = vector.broadcast %cst_14 : f32 to vector<1x2x16x1xf32>
    %20 = vector.extract_strided_slice %10 {offsets = [0, 0, 0, 0], sizes = [1, 2, 16, 15], strides = [1, 1, 1, 1]} : vector<1x2x16x16xf32> to vector<1x2x16x15xf32>
    %21 = tpu.concatenate %19, %20 in 3 : vector<1x2x16x1xf32>, vector<1x2x16x15xf32> -> vector<1x2x16x16xf32>
    %cst_15 = arith.constant 0.244201347 : f32
    %22 = vector.broadcast %cst_15 : f32 to vector<1x2x16x16xf32>
    %23 = arith.mulf %22, %21 : vector<1x2x16x16xf32>
    %24 = arith.addf %18, %23 : vector<1x2x16x16xf32>
    %cst_16 = arith.constant 0.000000e+00 : f32
    %25 = vector.broadcast %cst_16 : f32 to vector<1x2x16x2xf32>
    %26 = vector.extract_strided_slice %10 {offsets = [0, 0, 0, 2], sizes = [1, 2, 16, 14], strides = [1, 1, 1, 1]} : vector<1x2x16x16xf32> to vector<1x2x16x14xf32>
    %27 = tpu.concatenate %26, %25 in 3 : vector<1x2x16x14xf32>, vector<1x2x16x2xf32> -> vector<1x2x16x16xf32>
    %cst_17 = arith.constant 0.054488685 : f32
    %28 = vector.broadcast %cst_17 : f32 to vector<1x2x16x16xf32>
    %29 = arith.mulf %28, %27 : vector<1x2x16x16xf32>
    %30 = arith.addf %24, %29 : vector<1x2x16x16xf32>
    %cst_18 = arith.constant 0.000000e+00 : f32
    %31 = vector.broadcast %cst_18 : f32 to vector<1x2x16x2xf32>
    %32 = vector.extract_strided_slice %10 {offsets = [0, 0, 0, 0], sizes = [1, 2, 16, 14], strides = [1, 1, 1, 1]} : vector<1x2x16x16xf32> to vector<1x2x16x14xf32>
    %33 = tpu.concatenate %31, %32 in 3 : vector<1x2x16x2xf32>, vector<1x2x16x14xf32> -> vector<1x2x16x16xf32>
    %cst_19 = arith.constant 0.054488685 : f32
    %34 = vector.broadcast %cst_19 : f32 to vector<1x2x16x16xf32>
    %35 = arith.mulf %34, %33 : vector<1x2x16x16xf32>
    %36 = arith.addf %30, %35 : vector<1x2x16x16xf32>
    %cst_20 = arith.constant 0.402619958 : f32
    %37 = vector.broadcast %cst_20 : f32 to vector<1x2x16x16xf32>
    %38 = arith.mulf %37, %36 : vector<1x2x16x16xf32>
    %cst_21 = arith.constant 0.000000e+00 : f32
    %39 = vector.broadcast %cst_21 : f32 to vector<1x2x1x16xf32>
    %40 = vector.extract_strided_slice %36 {offsets = [0, 0, 1, 0], sizes = [1, 2, 15, 16], strides = [1, 1, 1, 1]} : vector<1x2x16x16xf32> to vector<1x2x15x16xf32>
    %41 = tpu.concatenate %40, %39 in 2 : vector<1x2x15x16xf32>, vector<1x2x1x16xf32> -> vector<1x2x16x16xf32>
    %cst_22 = arith.constant 0.244201347 : f32
    %42 = vector.broadcast %cst_22 : f32 to vector<1x2x16x16xf32>
    %43 = arith.mulf %42, %41 : vector<1x2x16x16xf32>
    %44 = arith.addf %38, %43 : vector<1x2x16x16xf32>
    %cst_23 = arith.constant 0.000000e+00 : f32
    %45 = vector.broadcast %cst_23 : f32 to vector<1x2x1x16xf32>
    %46 = vector.extract_strided_slice %36 {offsets = [0, 0, 0, 0], sizes = [1, 2, 15, 16], strides = [1, 1, 1, 1]} : vector<1x2x16x16xf32> to vector<1x2x15x16xf32>
    %47 = tpu.concatenate %45, %46 in 2 : vector<1x2x1x16xf32>, vector<1x2x15x16xf32> -> vector<1x2x16x16xf32>
    %cst_24 = arith.constant 0.244201347 : f32
    %48 = vector.broadcast %cst_24 : f32 to vector<1x2x16x16xf32>
    %49 = arith.mulf %48, %47 : vector<1x2x16x16xf32>
    %50 = arith.addf %44, %49 : vector<1x2x16x16xf32>
    %cst_25 = arith.constant 0.000000e+00 : f32
    %51 = vector.broadcast %cst_25 : f32 to vector<1x2x2x16xf32>
    %52 = vector.extract_strided_slice %36 {offsets = [0, 0, 2, 0], sizes = [1, 2, 14, 16], strides = [1, 1, 1, 1]} : vector<1x2x16x16xf32> to vector<1x2x14x16xf32>
    %53 = tpu.concatenate %52, %51 in 2 : vector<1x2x14x16xf32>, vector<1x2x2x16xf32> -> vector<1x2x16x16xf32>
    %cst_26 = arith.constant 0.054488685 : f32
    %54 = vector.broadcast %cst_26 : f32 to vector<1x2x16x16xf32>
    %55 = arith.mulf %54, %53 : vector<1x2x16x16xf32>
    %56 = arith.addf %50, %55 : vector<1x2x16x16xf32>
    %cst_27 = arith.constant 0.000000e+00 : f32
    %57 = vector.broadcast %cst_27 : f32 to vector<1x2x2x16xf32>
    %58 = vector.extract_strided_slice %36 {offsets = [0, 0, 0, 0], sizes = [1, 2, 14, 16], strides = [1, 1, 1, 1]} : vector<1x2x16x16xf32> to vector<1x2x14x16xf32>
    %59 = tpu.concatenate %57, %58 in 2 : vector<1x2x2x16xf32>, vector<1x2x14x16xf32> -> vector<1x2x16x16xf32>
    %cst_28 = arith.constant 0.054488685 : f32
    %60 = vector.broadcast %cst_28 : f32 to vector<1x2x16x16xf32>
    %61 = arith.mulf %60, %59 : vector<1x2x16x16xf32>
    %62 = arith.addf %56, %61 : vector<1x2x16x16xf32>
    %63 = arith.subf %10, %62 : vector<1x2x16x16xf32>
    %c0_29 = arith.constant 0 : index
    %c0_30 = arith.constant 0 : index
    %c0_31 = arith.constant 0 : index
    %c0_32 = arith.constant 0 : index
    %64 = vector.load %arg5[%c0_29, %c0_30, %c0_31, %c0_32] : memref<1x2x16x16xf32, #tpu.memory_space<vmem>>, vector<1x2x16x16xf32>
    tpu.vector_store %arg5[%c0_29, %c0_30, %c0_31, %c0_32], %63 {strides = array<i32>} : memref<1x2x16x16xf32, #tpu.memory_space<vmem>>, vector<1x2x16x16xf32>,
    return
  }
  func.func @transform_0(%arg0: i32, %arg1: i32) -> (i32, i32, i32, i32) {
    %c0_i32 = arith.constant 0 : i32
    %c0_i32_0 = arith.constant 0 : i32
    %c0_i32_1 = arith.constant 0 : i32
    return %arg0, %arg1, %c0_i32, %c0_i32_0 : i32, i32, i32, i32
  }
  func.func @transform_1(%arg0: i32, %arg1: i32) -> (i32, i32, i32, i32) {
    %c0_i32 = arith.constant 0 : i32
    %c0_i32_0 = arith.constant 0 : i32
    %c0_i32_1 = arith.constant 0 : i32
    return %arg0, %arg1, %c0_i32, %c0_i32_0 : i32, i32, i32, i32
  }
  func.func @transform_2(%arg0: i32, %arg1: i32) -> (i32, i32, i32, i32) {
    %c0_i32 = arith.constant 0 : i32
    %c0_i32_0 = arith.constant 0 : i32
    %c0_i32_1 = arith.constant 0 : i32
    %c0_i32_2 = arith.constant 0 : i32
    return %arg0, %c0_i32, %c0_i32_0, %c0_i32_1 : i32, i32, i32, i32
  }
  func.func @transform_3(%arg0: i32, %arg1: i32) -> (i32, i32, i32, i32) {
    %c0_i32 = arith.constant 0 : i32
    %c0_i32_0 = arith.constant 0 : i32
    %c0_i32_1 = arith.constant 0 : i32
    return %arg0, %arg1, %c0_i32, %c0_i32_0 : i32, i32, i32, i32
  }
}

module attributes {stable_mosaic.version = 11 : i64} {
  func.func @_normalize_kernel(%arg0: i32, %arg1: i32, %arg2: memref<1x4x256xf32, #tpu.memory_space<vmem>>, %arg3: memref<1x1x256xf32, #tpu.memory_space<vmem>>, %arg4: memref<1x4x1xf32, #tpu.memory_space<vmem>>, %arg5: memref<1x4x1xf32, #tpu.memory_space<vmem>>, %arg6: memref<1x4x256xf32, #tpu.memory_space<vmem>>) attributes {dimension_semantics = [#tpu.dimension_semantics<parallel>, #tpu.dimension_semantics<parallel>], iteration_bounds = array<i64: 2, 1>, scalar_prefetch = 0 : i64, scratch_operands = 0 : i64, tpu.core_type = #tpu.core_type<tc>, window_params = [{transform_indices = @transform_0, window_bounds = array<i64: 1, 4, 256>}, {transform_indices = @transform_1, window_bounds = array<i64: 1, 1, 256>}, {transform_indices = @transform_2, window_bounds = array<i64: 1, 4, 1>}, {transform_indices = @transform_3, window_bounds = array<i64: 1, 4, 1>}, {transform_indices = @transform_4, window_bounds = array<i64: 1, 4, 256>}]} {
    %c0 = arith.constant 0 : index
    %c0_0 = arith.constant 0 : index
    %c0_1 = arith.constant 0 : index
    %0 = vector.load %arg2[%c0, %c0_0, %c0_1] : memref<1x4x256xf32, #tpu.memory_space<vmem>>, vector<1x4x256xf32>
    %c0_2 = arith.constant 0 : index
    %c0_3 = arith.constant 0 : index
    %c0_4 = arith.constant 0 : index
    %1 = vector.load %arg4[%c0_2, %c0_3, %c0_4] : memref<1x4x1xf32, #tpu.memory_space<vmem>>, vector<1x4x1xf32>
    %2 = vector.broadcast %1 : vector<1x4x1xf32> to vector<1x4x256xf32>
    %3 = arith.subf %0, %2 : vector<1x4x256xf32>
    %c0_5 = arith.constant 0 : index
    %c0_6 = arith.constant 0 : index
    %c0_7 = arith.constant 0 : index
    %4 = vector.load %arg5[%c0_5, %c0_6, %c0_7] : memref<1x4x1xf32, #tpu.memory_space<vmem>>, vector<1x4x1xf32>
    %5 = vector.broadcast %4 : vector<1x4x1xf32> to vector<1x4x256xf32>
    %6 = arith.mulf %3, %5 : vector<1x4x256xf32>
    %c0_8 = arith.constant 0 : index
    %c0_9 = arith.constant 0 : index
    %c0_10 = arith.constant 0 : index
    %7 = vector.load %arg3[%c0_8, %c0_9, %c0_10] : memref<1x1x256xf32, #tpu.memory_space<vmem>>, vector<1x1x256xf32>
    %8 = vector.broadcast %7 : vector<1x1x256xf32> to vector<1x4x256xf32>
    %9 = arith.mulf %6, %8 : vector<1x4x256xf32>
    %c0_11 = arith.constant 0 : index
    %c0_12 = arith.constant 0 : index
    %c0_13 = arith.constant 0 : index
    %10 = vector.load %arg6[%c0_11, %c0_12, %c0_13] : memref<1x4x256xf32, #tpu.memory_space<vmem>>, vector<1x4x256xf32>
    tpu.vector_store %arg6[%c0_11, %c0_12, %c0_13], %9 {strides = array<i32>} : memref<1x4x256xf32, #tpu.memory_space<vmem>>, vector<1x4x256xf32>,
    return
  }
  func.func @transform_0(%arg0: i32, %arg1: i32) -> (i32, i32, i32) {
    %c0_i32 = arith.constant 0 : i32
    %c0_i32_0 = arith.constant 0 : i32
    return %arg0, %c0_i32, %arg1 : i32, i32, i32
  }
  func.func @transform_1(%arg0: i32, %arg1: i32) -> (i32, i32, i32) {
    %c0_i32 = arith.constant 0 : i32
    %c0_i32_0 = arith.constant 0 : i32
    return %arg0, %c0_i32, %arg1 : i32, i32, i32
  }
  func.func @transform_2(%arg0: i32, %arg1: i32) -> (i32, i32, i32) {
    %c0_i32 = arith.constant 0 : i32
    %c0_i32_0 = arith.constant 0 : i32
    %c0_i32_1 = arith.constant 0 : i32
    return %arg0, %c0_i32, %c0_i32_0 : i32, i32, i32
  }
  func.func @transform_3(%arg0: i32, %arg1: i32) -> (i32, i32, i32) {
    %c0_i32 = arith.constant 0 : i32
    %c0_i32_0 = arith.constant 0 : i32
    %c0_i32_1 = arith.constant 0 : i32
    return %arg0, %c0_i32, %c0_i32_0 : i32, i32, i32
  }
  func.func @transform_4(%arg0: i32, %arg1: i32) -> (i32, i32, i32) {
    %c0_i32 = arith.constant 0 : i32
    %c0_i32_0 = arith.constant 0 : i32
    return %arg0, %c0_i32, %arg1 : i32, i32, i32
  }
}

</mosaic_0001>

<bundles_post_ra>
// kernel: hfc_filter.2
= control target key start
LH: loop header
LB: loop body
LE: loop exit
PB: predicated region body
PF: predicated region fallthrough
CT: control target
= control target key end

     0   :  { %s776_s12 = smov 0   ;;  %s778_s13 = smov 0   ;;  %s914_s0 = inlined_call_operand.vmem [shape: f32[2,4,1,1], index: 0, kind: input, shape index: {}]   ;;  %s915_s1 = inlined_call_operand.vmem [shape: f32[2,4,16,16], index: 1, kind: input, shape index: {}]   ;;  %s916_s2 = inlined_call_operand.vmem [shape: f32[2,1,16,16], index: 2, kind: input, shape index: {}]   ;;  %s917_s3 = inlined_call_operand.vmem [shape: f32[2,4,16,16], index: 3, kind: output, shape index: {}]  }
   0x1   :  { %s780_s14 = smov 0   ;;  %s782_s15 = smov 0  }
   0x2   :  { %s784_s16 = smov 0  }
   0x3 LB: > { %s22_s17 = sadd.s32 1, %s741_s14  ;;  %s25_s18 = sadd.s32 1, %s745_s15  ;;  %s749_s16 = sphi %s784_s16, %s13_s16   ;;  %s745_s15 = sphi %s782_s15, %s921_s15   ;;  %s741_s14 = sphi %s780_s14, %s920_s14   ;;  %s737_s13 = sphi %s778_s13, %s919_s13   ;;  %s733_s12 = sphi %s776_s12, %s918_s12  }
   0x4   : > { %p23_p0 = scmp.ge.s32.totalorder %s22_s17, 2  ;;  %p647_p1 = scmp.ge.s32.totalorder %s749_s16, 1 }
   0x5   : > { %p185_p2 = scmp.lt.s32.totalorder %s749_s16, 5 }
   0x6   : > { %s923_s17 = smov (%p23_p0, %s22_s17), 0  ;;  %s925_s18 = smov (!%p23_p0, %s25_s18), %s745_s15 }
   0x7   : > { %p186_p3 = pnand %p647_p1, %p185_p2  ;;  %p27_p4 = scmp.ge.s32.totalorder %s925_s18, 2 }
   0x8   : > { %s648_s19 = sshll.u32 (!%p186_p3), %s733_s12, 1  ;;  %p233_p5 = scmp.lt.s32.totalorder (!%p186_p3), %s737_s13, 1 }
   0x9   : > { %s927_s18 = smov (%p27_p4, %s925_s18), 0  ;;  %189 = sbr.rel (%p186_p3) target bundleno = 318 (0x13e), region = 32 }
   0xa   : > { %p235_p6 = scmp.lt.s32.totalorder (!%p186_p3), %s648_s19, 3  ;;  %s752_s9 = smov (!%p186_p3), 127  }
   0xb   : > { %s753_s10 = smov (!%p186_p3), 1   ;;  %s754_s11 = smov (!%p186_p3), 126  }
   0xc   : > { %s755_s12 = smov (!%p186_p3), 2  }
   0xe   : > { %v751_v0 = vmov 0   ;;  %s929_s13 = smov (!%p233_p5, %s737_s13), 1  ;;  %s931_s19 = smov (!%p235_p6, %s648_s19), 3  ;;  %vm328_vm0 = vcmask 121856   ;;  %vm353_vm1 = vcmask 7168   ;;  %vm378_vm2 = vcmask 113664  }
   0xf   : > { %710 = vset.pattern.permute.xlu0 %v751_v0  ;;  %s649_s20 = sshll.u32 %s929_s13, 2  ;;  %s652_s21 = sshll.u32 %s929_s13, 3  ;;  %vm403_vm3 = vcmask 15360   ;;  %vm445_vm4 = vcmask 1040384   ;;  %vm487_vm5 = vcmask 1041408   ;;  %vm424_vm6 = vcmask 1046528  }
  0x10   : > { %s238_s22 = sadd.s32 %s649_s20, %s931_s19  ;;  %s651_s23 = sshll.u32 %s931_s19, 1  ;;  %vm466_vm7 = vcmask 1045504   ;;  %vm512_vm8 = vcmask 130048  }
  0x11   : > { %s239_s26 = scalar_lea.vmem %s914_s0, %s238_s22  ;;  %s809_s27 = sadd.s32 %s652_s21, %s651_s23 }
  0x12   : > { %s653_s28 = sshll.u32 %s809_s27, 3  ;;  %v660_v1 = vld [vmem:[%s239_s26] ss:$0 sm:$0xff]  ;;  %s664_s29 = sshll.u32 %s929_s13, 4  ;;  %v661_v2 = vld [vmem:[%s239_s26 + $0x1] ss:$0 sm:$0xff] }
  0x13   : > { %s250_s5 = scalar_lea.vmem %s915_s1, %s653_s28  ;;  %293 = vperm.xlu0 %710, %v660_v1   ;;  %s256_s8 = scalar_lea.vmem %s916_s2, %s664_s29 }
  0x14   : > { %v268_v3 = vld [vmem:[%s250_s5] sm:$0xff]  ;;  %v269_v4 = vld [vmem:[%s250_s5 + $0x8] sm:$0xff]  ;;  %v270_v5 = vld [vmem:[%s250_s5 + $0x10] sm:$0xff]  ;;  %s878_s20 = scalar_lea.vmem %s917_s3, %s653_s28 }
  0x15   : > { %v272_v6 = vld [vmem:[%s256_s8] sm:$0xff]  ;;  %v273_v7 = vld [vmem:[%s256_s8 + $0x8] sm:$0xff]  ;;  %v271_v8 = vld [vmem:[%s250_s5 + $0x18] sm:$0xff] }
  0x16   : > { %v274_v9 = vmul.f32 %v272_v6, %v268_v3  ;;  %v275_v10 = vmul.f32 %v273_v7, %v269_v4  ;;  %v276_v11 = vmul.f32 %v272_v6, %v270_v5  ;;  %v277_v12 = vmul.f32 %v273_v7, %v271_v8 }
  0x17   : > { %297 = vperm.xlu0 %710, %v661_v2   ;;  %v278_v13 = vsub.f32 1.0, %v272_v6  ;;  %v279_v14 = vsub.f32 1.0, %v273_v7 }
  0x8e   : > { %v294_v15 = vpop.permute.xlu0 %293 }
  0x8f   : > { %v300_v16 = vmul.f32 %v294_v15, %v278_v13  ;;  %v301_v17 = vmul.f32 %v294_v15, %v279_v14 }
  0x91   : > { %v820_v18 = vadd.f32 %v300_v16, %v274_v9  ;;  %v822_v19 = vadd.f32 %v301_v17, %v275_v10 }
  0x92   : > { %v298_v20 = vpop.permute.xlu0 %297 }
  0x93   : > { %v302_v21 = vmul.f32 %v298_v20, %v278_v13  ;;  %v303_v22 = vmul.f32 %v298_v20, %v279_v14  ;;  %316 = vrot.lane.b32.xlu1 %v820_v18, %s752_s9  ;;  %v308_v38 = vmul.f32 0.40261996, %v820_v18  ;;  %v309_v52 = vmul.f32 0.40261996, %v822_v19 }
  0x95   : > { %v825_v23 = vadd.f32 %v302_v21, %v276_v11  ;;  %v827_v24 = vadd.f32 %v303_v22, %v277_v12 }
  0x97   : > { %318 = vrot.lane.b32.xlu1 %v822_v19, %s752_s9  ;;  %320 = vrot.lane.b32.xlu0 %v825_v23, %s752_s9  ;;  %v310_v63 = vmul.f32 0.40261996, %v825_v23  ;;  %v311_v0 = vmul.f32 0.40261996, %v827_v24 }
  0x9b   : > { %322 = vrot.lane.b32.xlu1 %v827_v24, %s752_s9  ;;  %341 = vrot.lane.b32.xlu0 %v820_v18, %s753_s10 }
  0x9f   : > { %343 = vrot.lane.b32.xlu1 %v822_v19, %s753_s10  ;;  %345 = vrot.lane.b32.xlu0 %v825_v23, %s753_s10 }
  0xa3   : > { %347 = vrot.lane.b32.xlu1 %v827_v24, %s753_s10  ;;  %366 = vrot.lane.b32.xlu0 %v820_v18, %s754_s11 }
  0xa7   : > { %368 = vrot.lane.b32.xlu1 %v822_v19, %s754_s11  ;;  %370 = vrot.lane.b32.xlu0 %v825_v23, %s754_s11 }
  0xab   : > { %372 = vrot.lane.b32.xlu1 %v827_v24, %s754_s11  ;;  %391 = vrot.lane.b32.xlu0 %v820_v18, %s755_s12 }
  0xaf   : > { %393 = vrot.lane.b32.xlu1 %v822_v19, %s755_s12  ;;  %395 = vrot.lane.b32.xlu0 %v825_v23, %s755_s12 }
  0xb3   : > { %397 = vrot.lane.b32.xlu1 %v827_v24, %s755_s12 }
 0x105   : > { %v317_v25 = vpop.permute.xlu1 %316 }
 0x106   : > { %v329_v32 = vsel %vm328_vm0, %v317_v25, 0.0 }
 0x107   : > { %v333_v36 = vmul.f32 0.24420135, %v329_v32 }
 0x109   : > { %v319_v26 = vpop.permute.xlu1 %318  ;;  %v321_v27 = vpop.permute.xlu0 %320  ;;  %v337_v43 = vadd.f32 %v333_v36, %v308_v38 }
 0x10a   : > { %v330_v39 = vsel %vm328_vm0, %v319_v26, 0.0  ;;  %v331_v47 = vsel %vm328_vm0, %v321_v27, 0.0 }
 0x10b   : > { %v334_v46 = vmul.f32 0.24420135, %v330_v39  ;;  %v335_v56 = vmul.f32 0.24420135, %v331_v47 }
 0x10d   : > { %v323_v28 = vpop.permute.xlu1 %322  ;;  %v342_v29 = vpop.permute.xlu0 %341  ;;  %v338_v60 = vadd.f32 %v334_v46, %v309_v52  ;;  %v339_v9 = vadd.f32 %v335_v56, %v310_v63 }
 0x10e   : > { %v354_v35 = vsel %vm353_vm1, 0.0, %v342_v29  ;;  %v332_v57 = vsel %vm328_vm0, %v323_v28, 0.0 }
 0x10f   : > { %v358_v40 = vmul.f32 0.24420135, %v354_v35  ;;  %v336_v5 = vmul.f32 0.24420135, %v332_v57 }
 0x111   : > { %v344_v30 = vpop.permute.xlu1 %343  ;;  %v346_v31 = vpop.permute.xlu0 %345  ;;  %v362_v48 = vadd.f32 %v358_v40, %v337_v43  ;;  %v340_v20 = vadd.f32 %v336_v5, %v311_v0 }
 0x112   : > { %v355_v44 = vsel %vm353_vm1, 0.0, %v344_v30  ;;  %v356_v54 = vsel %vm353_vm1, 0.0, %v346_v31 }
 0x113   : > { %v359_v53 = vmul.f32 0.24420135, %v355_v44  ;;  %v360_v1 = vmul.f32 0.24420135, %v356_v54 }
 0x115   : > { %v348_v33 = vpop.permute.xlu1 %347  ;;  %v367_v34 = vpop.permute.xlu0 %366  ;;  %v363_v6 = vadd.f32 %v359_v53, %v338_v60  ;;  %v364_v15 = vadd.f32 %v360_v1, %v339_v9 }
 0x116   : > { %v379_v37 = vsel %vm378_vm2, %v367_v34, 0.0  ;;  %v357_v10 = vsel %vm353_vm1, 0.0, %v348_v33 }
 0x117   : > { %v383_v45 = vmul.f32 0.054488685, %v379_v37  ;;  %v361_v21 = vmul.f32 0.24420135, %v357_v10 }
 0x119   : > { %v369_v41 = vpop.permute.xlu1 %368  ;;  %v371_v42 = vpop.permute.xlu0 %370  ;;  %v387_v58 = vadd.f32 %v383_v45, %v362_v48 }
 0x11a   : > { %v380_v49 = vsel %vm378_vm2, %v369_v41, 0.0  ;;  %v381_v62 = vsel %vm378_vm2, %v371_v42, 0.0  ;;  %v365_v42 = vadd.f32 %v361_v21, %v340_v20 }
 0x11b   : > { %v384_v61 = vmul.f32 0.054488685, %v380_v49  ;;  %v385_v11 = vmul.f32 0.054488685, %v381_v62 }
 0x11d   : > { %v373_v50 = vpop.permute.xlu1 %372  ;;  %v392_v51 = vpop.permute.xlu0 %391  ;;  %v388_v12 = vadd.f32 %v384_v61, %v363_v6  ;;  %v389_v26 = vadd.f32 %v385_v11, %v364_v15 }
 0x11e   : > { %v404_v55 = vsel %vm403_vm3, 0.0, %v392_v51  ;;  %v382_v13 = vsel %vm378_vm2, %v373_v50, 0.0 }
 0x11f   : > { %v408_v59 = vmul.f32 0.054488685, %v404_v55  ;;  %v386_v27 = vmul.f32 0.054488685, %v382_v13 }
 0x121   : > { %v412_v2 = vadd.f32 %v408_v59, %v387_v58  ;;  %v394_v3 = vpop.permute.xlu1 %393  ;;  %v396_v4 = vpop.permute.xlu0 %395  ;;  %v390_v54 = vadd.f32 %v386_v27, %v365_v42 }
 0x122   : > { %v405_v7 = vsel %vm403_vm3, 0.0, %v394_v3  ;;  %v406_v8 = vsel %vm403_vm3, 0.0, %v396_v4 }
 0x123   : > { %v409_v14 = vmul.f32 0.054488685, %v405_v7  ;;  %v446_v16 = vrot.slane %v412_v2, 7  ;;  %v410_v17 = vmul.f32 0.054488685, %v406_v8  ;;  %v425_v29 = vrot.slane %v412_v2, 1 }
 0x124   : > { %v416_v28 = vmul.f32 0.40261996, %v412_v2  ;;  %v488_v30 = vrot.slane %v412_v2, 6  ;;  %v467_v35 = vrot.slane %v412_v2, 2 }
 0x125   : > { %v413_v22 = vadd.f32 %v409_v14, %v388_v12  ;;  %v398_v25 = vpop.permute.xlu1 %397  ;;  %v456_v34 = vsel %vm445_vm4, 0.0, %v446_v16  ;;  %v414_v36 = vadd.f32 %v410_v17, %v389_v26 }
 0x126   : > { %v407_v37 = vsel %vm403_vm3, 0.0, %v398_v25  ;;  %v458_v46 = vmul.f32 0.24420135, %v456_v34  ;;  %v498_v47 = vsel %vm487_vm5, 0.0, %v488_v30 }
 0x127   : > { %v426_v31 = vrot.slane %v413_v22, 1  ;;  %v447_v32 = vrot.slane %v413_v22, 7  ;;  %v468_v33 = vrot.slane %v413_v22, 2  ;;  %v489_v41 = vrot.slane %v413_v22, 6 }
 0x128   : > { %v417_v43 = vmul.f32 0.40261996, %v413_v22  ;;  %v449_v53 = vrot.slane %v414_v36, 7  ;;  %v411_v56 = vmul.f32 0.054488685, %v407_v37  ;;  %v428_v63 = vrot.slane %v414_v36, 1 }
 0x129   : > { %v427_v38 = vsel %vm424_vm6, %v425_v29, %v426_v31  ;;  %v435_v39 = vsel %vm424_vm6, %v426_v31, 0.0  ;;  %v448_v40 = vsel %vm445_vm4, %v446_v16, %v447_v32  ;;  %v469_v48 = vsel %vm466_vm7, %v467_v35, %v468_v33 }
 0x12a   : > { %v437_v44 = vmul.f32 0.24420135, %v427_v38  ;;  %v438_v45 = vmul.f32 0.24420135, %v435_v39  ;;  %v477_v49 = vsel %vm466_vm7, %v468_v33, 0.0  ;;  %v490_v55 = vsel %vm487_vm5, %v488_v30, %v489_v41 }
 0x12b   : > { %v459_v52 = vmul.f32 0.24420135, %v448_v40  ;;  %v479_v59 = vmul.f32 0.054488685, %v469_v48  ;;  %v480_v60 = vmul.f32 0.054488685, %v477_v49  ;;  %v415_v0 = vadd.f32 %v411_v56, %v390_v54 }
 0x12c   : > { %v441_v50 = vadd.f32 %v437_v44, %v416_v28  ;;  %v442_v51 = vadd.f32 %v438_v45, %v417_v43  ;;  %v500_v61 = vmul.f32 0.054488685, %v498_v47  ;;  %v418_v62 = vmul.f32 0.40261996, %v414_v36 }
 0x12d   : > { %v501_v3 = vmul.f32 0.054488685, %v490_v55  ;;  %v457_v4 = vsel %vm445_vm4, 0.0, %v449_v53  ;;  %v470_v5 = vrot.slane %v414_v36, 2  ;;  %v429_v6 = vrot.slane %v415_v0, 1 }
 0x12e   : > { %v462_v57 = vadd.f32 %v458_v46, %v441_v50  ;;  %v463_v58 = vadd.f32 %v459_v52, %v442_v51  ;;  %v450_v7 = vrot.slane %v415_v0, 7  ;;  %v471_v8 = vrot.slane %v415_v0, 2 }
 0x12f   : > { %v491_v11 = vrot.slane %v414_v36, 6  ;;  %v419_v12 = vmul.f32 0.40261996, %v415_v0  ;;  %v430_v13 = vsel %vm424_vm6, %v428_v63, %v429_v6  ;;  %v436_v14 = vsel %vm424_vm6, %v429_v6, 0.0 }
 0x130   : > { %v483_v1 = vadd.f32 %v479_v59, %v462_v57  ;;  %v484_v2 = vadd.f32 %v480_v60, %v463_v58  ;;  %v451_v15 = vsel %vm445_vm4, %v449_v53, %v450_v7  ;;  %v492_v16 = vrot.slane %v415_v0, 6 }
 0x131   : > { %v439_v21 = vmul.f32 0.24420135, %v430_v13  ;;  %v440_v22 = vmul.f32 0.24420135, %v436_v14  ;;  %v472_v25 = vsel %vm466_vm7, %v470_v5, %v471_v8  ;;  %v478_v26 = vsel %vm466_vm7, %v471_v8, 0.0 }
 0x132   : > { %v504_v9 = vadd.f32 %v500_v61, %v483_v1  ;;  %v505_v10 = vadd.f32 %v501_v3, %v484_v2  ;;  %v460_v27 = vmul.f32 0.24420135, %v457_v4  ;;  %v461_v30 = vmul.f32 0.24420135, %v451_v15 }
 0x133   : > { %v443_v28 = vadd.f32 %v439_v21, %v418_v62  ;;  %v444_v29 = vadd.f32 %v440_v22, %v419_v12  ;;  %v481_v33 = vmul.f32 0.054488685, %v472_v25  ;;  %v482_v34 = vmul.f32 0.054488685, %v478_v26 }
 0x134   : > { %v508_v17 = vsub.f32 %v820_v18, %v504_v9  ;;  %v509_v20 = vsub.f32 %v822_v19, %v505_v10  ;;  %v499_v18 = vsel %vm487_vm5, 0.0, %v491_v11  ;;  %v493_v19 = vsel %vm487_vm5, %v491_v11, %v492_v16 }
 0x135   : > { %v464_v31 = vadd.f32 %v460_v27, %v443_v28  ;;  %v465_v32 = vadd.f32 %v461_v30, %v444_v29  ;;  %v502_v35 = vmul.f32 0.054488685, %v499_v18  ;;  %v503_v38 = vmul.f32 0.054488685, %v493_v19 }
 0x136   : > { %513 = vst.msk [vmem:[%s878_s20] sm:$0xff] %vm512_vm8, %v508_v17  ;;  %514 = vst.msk [vmem:[%s878_s20 + $0x8] sm:$0xff] %vm512_vm8, %v509_v20 }
 0x137   : > { %v485_v36 = vadd.f32 %v481_v33, %v464_v31  ;;  %v486_v37 = vadd.f32 %v482_v34, %v465_v32 }
 0x139   : > { %v506_v39 = vadd.f32 %v502_v35, %v485_v36  ;;  %v507_v40 = vadd.f32 %v503_v38, %v486_v37 }
 0x13b   : > { %v510_v41 = vsub.f32 %v825_v23, %v506_v39  ;;  %v511_v42 = vsub.f32 %v827_v24, %v507_v40 }
 0x13d   : > { %515 = vst.msk [vmem:[%s878_s20 + $0x10] sm:$0xff] %vm512_vm8, %v510_v41  ;;  %516 = vst.msk [vmem:[%s878_s20 + $0x18] sm:$0xff] %vm512_vm8, %v511_v42 }
 0x13e PF: > { %s13_s16 = sadd.s32 1, %s749_s16   ;;  %s918_s12 = smov %s741_s14 }
 0x13f   : > { %p10_p7 = scmp.ge.s32.totalorder %s13_s16, 6   ;;  %s919_s13 = smov %s745_s15 }
 0x140   : > { %s920_s14 = smov %s923_s17  ;;  %s921_s15 = smov %s927_s18 }
 0x141   :  { %12 = sbr.rel (!%p10_p7) target bundleno = 3 (0x3), region = 68 }

// kernel: hfc_filter.3
= control target key start
LH: loop header
LB: loop body
LE: loop exit
PB: predicated region body
PF: predicated region fallthrough
CT: control target
= control target key end

     0   :  { %s567_s15 = smov 0   ;;  %s569_s16 = smov 0   ;;  %s614_s0 = inlined_call_operand.vmem [shape: f32[2,4,256], index: 0, kind: input, shape index: {}, may-alias: {0,4}]   ;;  %s615_s1 = inlined_call_operand.vmem [shape: f32[2,1,256], index: 1, kind: input, shape index: {}]   ;;  %s616_s2 = inlined_call_operand.vmem [shape: f32[2,4,1], index: 2, kind: input, shape index: {}]   ;;  %s617_s3 = inlined_call_operand.vmem [shape: f32[2,4,1], index: 3, kind: input, shape index: {}]   ;;  %s618_s4 = inlined_call_operand.vmem [shape: f32[2,4,256], index: 4, kind: output, shape index: {}, may-alias: {0,4}]  }
   0x1   :  { %s571_s17 = smov 0  }
   0x2 LB: > { %s26_s18 = sadd.s32 1, %s534_s16  ;;  %p477_p0 = scmp.ge.s32.totalorder %s538_s17, 1  ;;  %s538_s17 = sphi %s571_s17, %s14_s17   ;;  %s534_s16 = sphi %s569_s16, %s620_s16   ;;  %s530_s15 = sphi %s567_s15, %s619_s15  }
   0x3   : > { %p28_p1 = scmp.ge.s32.totalorder %s26_s18, 2  ;;  %p217_p2 = scmp.lt.s32.totalorder %s538_s17, 3 }
   0x5   : > { %s622_s18 = smov (%p28_p1, %s26_s18), 0  ;;  %p218_p3 = pnand %p477_p0, %p217_p2 }
   0x6   : > { %p268_p4 = scmp.lt.s32.totalorder (!%p218_p3), %s530_s15, 1 }
   0x7   : > { %221 = sbr.rel (%p218_p3) target bundleno = 151 (0x97), region = 36 }
   0xc   : > { %v540_v0 = vmov 0   ;;  %s624_s15 = smov (!%p268_p4, %s530_s15), 1  ;;  %v541_v3 = vmov 839922192   ;;  %v313_v5 = vlaneseq }
   0xd   : > { %515 = vset.pattern.permute.xlu0 %v540_v0  ;;  %s481_s19 = sshll.u32 %s624_s15, 2  ;;  %v311_v4 = vunpack.c.l.s4 %v541_v3  ;;  %s480_s26 = sshll.u32 %s624_s15, 1 }
   0xe   : > { %s289_s22 = scalar_lea.vmem %s616_s2, %s481_s19  ;;  %s293_s25 = scalar_lea.vmem %s617_s3, %s481_s19  ;;  %v314_v7 = vshrl.u32 %v313_v5, 7 }
   0xf   : > { %v305_v1 = vld [vmem:[%s289_s22] sm:$0xf]  ;;  %v312_v6 = vunpack.c.0.s8 %v311_v4  ;;  %s284_s29 = scalar_lea.vmem %s615_s1, %s480_s26  ;;  %s487_s30 = sshll.u32 %s624_s15, 3 }
  0x10   : > { %308 = vperm.xlu0 %515, %v305_v1   ;;  %v319_v2 = vld [vmem:[%s293_s25] sm:$0xf]  ;;  %v337_v9 = vsub.s32 0, %v314_v7  ;;  %v341_v10 = vsub.s32 1, %v314_v7  ;;  %s275_s7 = scalar_lea.vmem %s614_s0, %s487_s30  ;;  %s302_s10 = scalar_lea.vmem %s618_s4, %s487_s30 }
  0x11   : > { %v315_v8 = vsub.s32 %v312_v6, %v314_v7  ;;  %v333_v11 = vld [vmem:[%s284_s29] sm:$0x3] }
  0x12   : > { %v338_v14 = vrot.slane %v333_v11, %v337_v9  ;;  %v342_v15 = vrot.slane %v333_v11, %v341_v10  ;;  %v304_v16 = vld [vmem:[%s275_s7] sm:$0xff] }
  0x14   : > { %322 = vperm.xlu0 %515, %v319_v2   ;;  %v343_v20 = vcombine.low %v338_v14, %v342_v15 }
  0x8b   : > { %v309_v12 = vpop.permute.xlu0 %308 }
  0x8c   : > { %v316_v13 = vrot.slane %v309_v12, %v315_v8 }
  0x8e   : > { %v318_v18 = vsub.f32 %v304_v16, %v316_v13 }
  0x8f   : > { %v323_v17 = vpop.permute.xlu0 %322 }
  0x90   : > { %v330_v19 = vrot.slane %v323_v17, %v315_v8 }
  0x92   : > { %v332_v21 = vmul.f32 %v330_v19, %v318_v18 }
  0x94   : > { %v345_v22 = vmul.f32 %v343_v20, %v332_v21 }
  0x96   : > { %346 = vst [vmem:[%s302_s10] sm:$0xff] %v345_v22 }
  0x97 PF: > { %s14_s17 = sadd.s32 1, %s538_s17   ;;  %s619_s15 = smov %s534_s16 }
  0x98   : > { %p11_p5 = scmp.ge.s32.totalorder %s14_s17, 4   ;;  %s620_s16 = smov %s622_s18 }
  0x9a   :  { %13 = sbr.rel (!%p11_p5) target bundleno = 2 (0x2), region = 75 }

</bundles_post_ra>
